<compile_context>
chip_gen: v7x
topology: tpu7x:2x2x1
jax: 0.10.0
libtpu: 0.0.40
codegen_flags: <defaults>
</compile_context>

<pallas_src>
import functools

import jax
import jax.numpy as jnp
from jax import lax
from jax.experimental import pallas as pl
from jax.experimental.pallas import tpu as pltpu


def _channel_attention_kernel(x_ref, w1_ref, w2_ref, o_ref, *, hw, inv_hw):
    """x_ref/o_ref: (Bn, C, HWp); w1_ref: (Crp, C); w2_ref: (C, Crp)."""
    x = x_ref[...]                                        # (Bn, C, HWp), lane-dense
    hw_p = x.shape[-1]

    if hw_p == hw:                                        # static: no spatial pad
        x_sum, x_max = x, x
    else:                                                 # mask the zero-padded lanes
        lane = lax.broadcasted_iota(jnp.int32, x.shape, dimension=2)
        valid = lane < hw
        x_sum = jnp.where(valid, x, 0.0)
        x_max = jnp.where(valid, x, -jnp.inf)

    # Global average / max pooling over the spatial (lane) axis.
    avg = jnp.sum(x_sum, axis=-1, keepdims=True) * inv_hw  # (Bn, C, 1)
    mx = jnp.max(x_max, axis=-1, keepdims=True)            # (Bn, C, 1)

    # Fused shared MLP: one batched matmul over the 2 pooled columns per image.
    pooled = jnp.concatenate([avg, mx], axis=-1)            # (Bn, C, 2)
    w1 = w1_ref[...]                                        # (Crp, C)  loaded once
    w2 = w2_ref[...]                                        # (C, Crp)  loaded once
    h = jnp.einsum("rc,bck->brk", w1, pooled,
                   preferred_element_type=jnp.float32)      # (Bn, Crp, 2)
    h = jnp.maximum(h, 0.0)
    y = jnp.einsum("cr,brk->bck", w2, h,
                   preferred_element_type=jnp.float32)      # (Bn, C, 2)

    # Sum the avg/max branches, sigmoid, broadcast the per-channel gate.
    gate = jax.nn.sigmoid(y[..., 0:1] + y[..., 1:2])        # (Bn, C, 1)
    o_ref[...] = (x * gate).astype(o_ref.dtype)


def _pick_batch_block(n, per_image_bytes):
    """Choose how many images to process per grid step (must divide n)."""
    TARGET = 2 << 20      # aim for ~2 MiB x tiles (near HBM roofline)
    MAX_TILE = 6 << 20    # 2x(in+out) double-buffered stays < ~28 MiB (v7x-safe)
    MIN_SPLIT = 512 << 10 # only keep >=2 grid steps if a split tile is still fat

    bn = 1
    for d in range(1, n + 1):
        if n % d:
            continue
        if d * per_image_bytes > MAX_TILE:
            break
        bn = d
        if d * per_image_bytes >= TARGET:
            break

    # v7x megacore: keep >= 2 grid steps when tiles would still be >= 0.5 MiB.
    if bn == n and n > 1 and (n // 2) * per_image_bytes >= MIN_SPLIT:
        for d in range(n // 2, 0, -1):
            if n % d == 0:
                bn = d
                break
    return bn


def channel_attention(x_nchw, w1, w2):
    """ChannelAttention forward.

    x_nchw: (N, C, H, W) float32
    w1:     (Cr, C)  -- PyTorch fc[0].weight[:, :, 0, 0]  (no bias)
    w2:     (C, Cr)  -- PyTorch fc[2].weight[:, :, 0, 0]  (no bias)
    """
    N, C, H, W = x_nchw.shape
    Cr = w1.shape[0]
    dt = jnp.dtype(x_nchw.dtype)

    # Pad the bottleneck dim up to a sublane multiple (>= 8). Zero rows of w1
    # give relu(0)=0 hidden units; matching zero columns of w2 annihilate them.
    crp = max(8, ((Cr + 7) // 8) * 8)
    w1p = jnp.pad(w1, ((0, crp - Cr), (0, 0)))              # (Crp, C)
    w2p = jnp.pad(w2, ((0, 0), (0, crp - Cr)))              # (C, Crp)

    hw = H * W
    hw_p = ((hw + 127) // 128) * 128                        # lane-dense stores
    x3 = x_nchw.reshape(N, C, hw)
    if hw_p != hw:
        x3 = jnp.pad(x3, ((0, 0), (0, 0), (0, hw_p - hw)))  # kernel masks the pad

    per_image_bytes = C * hw_p * dt.itemsize
    bn = _pick_batch_block(N, per_image_bytes)
    grid = (N // bn,)

    # Explicit VMEM budget: double-buffered in + out tiles, weights, slack.
    tile_bytes = bn * per_image_bytes
    w_bytes = (w1p.size + w2p.size) * 4
    vmem_limit = min(max(4 * tile_bytes + 2 * w_bytes + (4 << 20), 16 << 20),
                     48 << 20)

    out = pl.pallas_call(
        functools.partial(_channel_attention_kernel,
                          hw=hw, inv_hw=1.0 / float(hw)),
        out_shape=jax.ShapeDtypeStruct((N, C, hw_p), x_nchw.dtype),
        grid=grid,
        in_specs=[
            pl.BlockSpec((bn, C, hw_p), lambda n: (n, 0, 0)),
            pl.BlockSpec((crp, C), lambda n: (0, 0)),
            pl.BlockSpec((C, crp), lambda n: (0, 0)),
        ],
        out_specs=pl.BlockSpec((bn, C, hw_p), lambda n: (n, 0, 0)),
        compiler_params=pltpu.CompilerParams(
            dimension_semantics=("parallel",),
            vmem_limit_bytes=int(vmem_limit)),
    )(x3, w1p, w2p)

    if hw_p != hw:
        out = out[:, :, :hw]
    return out.reshape(N, C, H, W)


# ---------------------------------------------------------------------------
# Pure-JAX reference (same semantics) for validation.
# ---------------------------------------------------------------------------
def reference_forward(x, w1, w2):
    avg = jnp.mean(x, axis=(2, 3))                          # (N, C)
    mx = jnp.max(x, axis=(2, 3))                            # (N, C)

    def fc(v):                                              # v: (N, C)
        h = jnp.maximum(v @ w1.T, 0.0)                      # (N, Cr)
        return h @ w2.T                                     # (N, C)

    gate = jax.nn.sigmoid(fc(avg) + fc(mx))
    return x * gate[:, :, None, None]


if __name__ == "__main__":
    # channel = 32, reduction = 16 -> Cr = 2; batch = 2, spatial = 16x16.
    N, C, H, W = 2, 32, 16, 16
    reduction = 16
    Cr = C // reduction

    key = jax.random.PRNGKey(0)
    kx, k1, k2 = jax.random.split(key, 3)
    x = jax.random.normal(kx, (N, C, H, W), jnp.float32)
    w1 = jax.random.normal(k1, (Cr, C), jnp.float32) * 0.2   # conv1 (1x1, no bias)
    w2 = jax.random.normal(k2, (C, Cr), jnp.float32) * 0.2   # conv2 (1x1, no bias)

    out = jax.block_until_ready(channel_attention(x, w1, w2))
    assert out.shape == (N, C, H, W)

    ref = jax.block_until_ready(reference_forward(x, w1, w2))
    err = float(jnp.max(jnp.abs(out - ref)))
    assert err < 5e-3, f"max abs error vs reference = {err}"

    print("KERNEL_OK")
</pallas_src>

<mosaic_0001>
module attributes {stable_mosaic.version = 11 : i64} {
  func.func @_channel_attention_kernel(%arg0: i32, %arg1: memref<2x32x256xf32, #tpu.memory_space<vmem>>, %arg2: memref<8x32xf32, #tpu.memory_space<vmem>>, %arg3: memref<32x8xf32, #tpu.memory_space<vmem>>, %arg4: memref<2x32x256xf32, #tpu.memory_space<vmem>>) attributes {dimension_semantics = [#tpu.dimension_semantics<parallel>], iteration_bounds = array<i64: 1>, scalar_prefetch = 0 : i64, scratch_operands = 0 : i64, tpu.core_type = #tpu.core_type<tc>, window_params = [{transform_indices = @transform_0, window_bounds = array<i64: 2, 32, 256>}, {pipeline_mode = #tpu.pipeline_mode<synchronous>, transform_indices = @transform_1, window_bounds = array<i64: 8, 32>}, {pipeline_mode = #tpu.pipeline_mode<synchronous>, transform_indices = @transform_2, window_bounds = array<i64: 32, 8>}, {transform_indices = @transform_3, window_bounds = array<i64: 2, 32, 256>}]} {
    %c0 = arith.constant 0 : index
    %c0_0 = arith.constant 0 : index
    %c0_1 = arith.constant 0 : index
    %0 = vector.load %arg1[%c0, %c0_0, %c0_1] : memref<2x32x256xf32, #tpu.memory_space<vmem>>, vector<2x32x256xf32>
    %cst = arith.constant dense<0.000000e+00> : vector<2x32xf32>
    %1 = vector.multi_reduction <add>, %0, %cst [2] : vector<2x32x256xf32> to vector<2x32xf32>
    %2 = vector.shape_cast %1 : vector<2x32xf32> to vector<2x32x1xf32>
    %cst_2 = arith.constant 3.906250e-03 : f32
    %3 = vector.broadcast %cst_2 : f32 to vector<2x32x1xf32>
    %4 = arith.mulf %2, %3 : vector<2x32x1xf32>
    %cst_3 = arith.constant dense<0xFF800000> : vector<2x32xf32>
    %5 = vector.multi_reduction <maximumf>, %0, %cst_3 [2] : vector<2x32x256xf32> to vector<2x32xf32>
    %6 = vector.shape_cast %5 : vector<2x32xf32> to vector<2x32x1xf32>
    %7 = tpu.concatenate %4, %6 in 2 : vector<2x32x1xf32>, vector<2x32x1xf32> -> vector<2x32x2xf32>
    %c0_4 = arith.constant 0 : index
    %c0_5 = arith.constant 0 : index
    %8 = vector.load %arg2[%c0_4, %c0_5] : memref<8x32xf32, #tpu.memory_space<vmem>>, vector<8x32xf32>
    %c0_6 = arith.constant 0 : index
    %c0_7 = arith.constant 0 : index
    %9 = vector.load %arg3[%c0_6, %c0_7] : memref<32x8xf32, #tpu.memory_space<vmem>>, vector<32x8xf32>
    "tpu.trace_start"() <{level = 10 : i32, message = "rc,bck->brk"}> : () -> ()
    %cst_8 = arith.constant dense<0.000000e+00> : vector<2x2x8xf32>
    %10 = tpu.matmul %7, %8, %cst_8 {dimension_numbers = #tpu.dot_dimension_numbers<[1], [1], [0, 2], [0], [0, 0, 0, 2, 1, 0], [], []>} : vector<2x32x2xf32>, vector<8x32xf32>, vector<2x2x8xf32> -> vector<2x2x8xf32>
    %11 = tpu.transpose %10, [0, 2, 1] : vector<2x2x8xf32> -> vector<2x8x2xf32>
    "tpu.trace_stop"() : () -> ()
    %cst_9 = arith.constant 0.000000e+00 : f32
    %12 = vector.broadcast %cst_9 : f32 to vector<2x8x2xf32>
    %13 = arith.maximumf %11, %12 : vector<2x8x2xf32>
    "tpu.trace_start"() <{level = 10 : i32, message = "cr,brk->bck"}> : () -> ()
    %cst_10 = arith.constant dense<0.000000e+00> : vector<2x2x32xf32>
    %14 = tpu.matmul %13, %9, %cst_10 {dimension_numbers = #tpu.dot_dimension_numbers<[1], [1], [0, 2], [0], [0, 0, 0, 2, 1, 0], [], []>} : vector<2x8x2xf32>, vector<32x8xf32>, vector<2x2x32xf32> -> vector<2x2x32xf32>
    %15 = tpu.transpose %14, [0, 2, 1] : vector<2x2x32xf32> -> vector<2x32x2xf32>
    "tpu.trace_stop"() : () -> ()
    %16 = vector.extract_strided_slice %15 {offsets = [0, 0, 0], sizes = [2, 32, 1], strides = [1, 1, 1]} : vector<2x32x2xf32> to vector<2x32x1xf32>
    %17 = vector.extract_strided_slice %15 {offsets = [0, 0, 1], sizes = [2, 32, 1], strides = [1, 1, 1]} : vector<2x32x2xf32> to vector<2x32x1xf32>
    %18 = arith.addf %16, %17 : vector<2x32x1xf32>
    %19 = arith.negf %18 : vector<2x32x1xf32>
    %20 = math.exp %19 : vector<2x32x1xf32>
    %cst_11 = arith.constant 1.000000e+00 : f32
    %21 = vector.broadcast %cst_11 : f32 to vector<2x32x1xf32>
    %22 = arith.addf %21, %20 : vector<2x32x1xf32>
    %23 = arith.divf %21, %22 : vector<2x32x1xf32>
    %24 = vector.broadcast %23 : vector<2x32x1xf32> to vector<2x32x256xf32>
    %25 = arith.mulf %0, %24 : vector<2x32x256xf32>
    %c0_12 = arith.constant 0 : index
    %c0_13 = arith.constant 0 : index
    %c0_14 = arith.constant 0 : index
    %26 = vector.load %arg4[%c0_12, %c0_13, %c0_14] : memref<2x32x256xf32, #tpu.memory_space<vmem>>, vector<2x32x256xf32>
    tpu.vector_store %arg4[%c0_12, %c0_13, %c0_14], %25 {strides = array<i32>} : memref<2x32x256xf32, #tpu.memory_space<vmem>>, vector<2x32x256xf32>,
    return
  }
  func.func @transform_0(%arg0: i32) -> (i32, i32, i32) {
    %c0_i32 = arith.constant 0 : i32
    %c0_i32_0 = arith.constant 0 : i32
    %c0_i32_1 = arith.constant 0 : i32
    return %arg0, %c0_i32, %c0_i32_0 : i32, i32, i32
  }
  func.func @transform_1(%arg0: i32) -> (i32, i32) {
    %c0_i32 = arith.constant 0 : i32
    %c0_i32_0 = arith.constant 0 : i32
    %c0_i32_1 = arith.constant 0 : i32
    return %c0_i32, %c0_i32_0 : i32, i32
  }
  func.func @transform_2(%arg0: i32) -> (i32, i32) {
    %c0_i32 = arith.constant 0 : i32
    %c0_i32_0 = arith.constant 0 : i32
    %c0_i32_1 = arith.constant 0 : i32
    return %c0_i32, %c0_i32_0 : i32, i32
  }
  func.func @transform_3(%arg0: i32) -> (i32, i32, i32) {
    %c0_i32 = arith.constant 0 : i32
    %c0_i32_0 = arith.constant 0 : i32
    %c0_i32_1 = arith.constant 0 : i32
    return %arg0, %c0_i32, %c0_i32_0 : i32, i32, i32
  }
}

</mosaic_0001>

<bundles_post_ra>
// kernel: tpu_custom_call.1
= control target key start
LH: loop header
LB: loop body
LE: loop exit
PB: predicated region body
PF: predicated region fallthrough
CT: control target
= control target key end

     0   :  { %8 = vsyncpa [#allocation3], 0  ;;  %s1059_s0 = inlined_call_operand.hbm [shape: f32[2,32,256], index: 0, kind: input, shape index: {}]   ;;  %s1060_s1 = inlined_call_operand.vmem [shape: f32[8,32], index: 1, kind: input, shape index: {}]   ;;  %s1061_s2 = inlined_call_operand.vmem [shape: f32[32,8], index: 2, kind: input, shape index: {}]   ;;  %s1062_s3 = inlined_call_operand.hbm [shape: f32[2,32,256], index: 3, kind: output, shape index: {}]  }
   0x1   :  { %9 = vsyncpa [#allocation4], 0  ;;  %s891_s12 = smov [#allocation2]   ;;  %s843_s16 = scalar_lea.hbm %s1059_s0, 2048 }
   0x2   :  { %s15_s13 = sshll.u32 %s891_s12, 4  ;;  %p844_p0 = scmp.ne.s32.totalorder %s1059_s0, %s843_s16  ;;  %s16_s13 = int_to_ptr.vmem [resolvable:$true] %s15_s13 }
   0x3   :  { %p847_p1 = scmp.lt.u32.totalorder %s843_s16, %s1059_s0 }
   0x5   :  { %p849_p2 = pnand %p847_p1, %p844_p0 }
   0x7   :  { %852 = shalt.err (!%p849_p2)
}
   0x8   :  { %s853_s21 = scalar_lea.vmem %s16_s13, 2048  ;;  %p858_p4 = scmp.lt.s32.totalorder %s16_s13, %s16_s13 }
   0x9   :  { %p854_p3 = scmp.ne.s32.totalorder %s16_s13, %s853_s21  ;;  %p859_p5 = scmp.lt.s32.totalorder %s853_s21, %s853_s21 }
   0xb   :  { %p860_p6 = por %p859_p5, %p858_p4 }
   0xd   :  { %p861_p7 = pnand %p860_p6, %p854_p3 }
   0xf   :  { %864 = shalt.err (!%p861_p7)
}
  0x10   :  { %s892_s22 = smov 256   ;;  %s893_s23 = smov 16  }
  0x11   :  { %21 = dma.hbm_to_vmem [thread:$0]  %s1059_s0, 2048, %s16_s13, [#allocation3], %s892_s22, %s892_s22, %s893_s23  }
  0x12   :  { %887 = dma.done.wait [#allocation3], 2048  }
  0x13   :  { %888 = vsyncadd [#allocation3], 4294965248  ;;  %v936_v0 = vld [vmem:[#allocation2 + $0x10] sm:$0xff]  ;;  %v938_v1 = vld [vmem:[#allocation2 + $0x18] sm:$0xff]  ;;  %vm101_vm0 = vcmask 7168   ;;  %v894_v51 = vmov 0.0  }
  0x14   :  { %v940_v2 = vld [vmem:[#allocation2] sm:$0xff]  ;;  %v48_v3 = vadd.f32 %v938_v1, %v936_v0  ;;  %v944_v4 = vld [vmem:[#allocation2 + $0x8] sm:$0xff]  ;;  %v946_v5 = vld [vmem:[#allocation2 + $0x50] sm:$0xff]  ;;  %v80_v21 = vmax.f32 %v936_v0, %v938_v1  ;;  %775 = vmatprep.subr.mxu0 %v894_v51  ;;  %vm189_vm1 = vcmask 261120   ;;  %vm895_vm2 = vmmov 0   ;;  %s900_s7 = smov [#allocation5]  }
  0x15   :  { %v948_v6 = vld [vmem:[#allocation2 + $0x58] sm:$0xff]  ;;  %v45_v7 = vadd.f32 %v944_v4, %v940_v2  ;;  %v952_v8 = vld [vmem:[#allocation2 + $0x40] sm:$0xff]  ;;  %v954_v9 = vld [vmem:[#allocation2 + $0x48] sm:$0xff]  ;;  %v77_v13 = vmax.f32 %v940_v2, %v944_v4  ;;  %777 = vmatprep.mubr.msk.f32.mxu0 %vm895_vm2, %v894_v51  ;;  %788 = vmatprep.mubr.msk.f32.mxu1 %vm895_vm2, %v894_v51  ;;  %vm416_vm3 = vcmask 64512   ;;  %s741_s8 = sshll.u32 %s900_s7, 4  ;;  %s742_s8 = int_to_ptr.vmem [resolvable:$true] %s741_s8 }
  0x16   :  { %49 = vadd.xlane.f32.xlu1 %v48_v3  ;;  %v60_v10 = vadd.f32 %v948_v6, %v946_v5  ;;  %v57_v11 = vadd.f32 %v954_v9, %v952_v8  ;;  %v89_v12 = vmax.f32 %v952_v8, %v954_v9  ;;  %v964_v14 = vld [vmem:[#allocation2 + $0x60] sm:$0xff]  ;;  %v966_v15 = vld [vmem:[#allocation2 + $0x68] sm:$0xff]  ;;  %v92_v20 = vmax.f32 %v946_v5, %v948_v6  ;;  %v980_v22 = vld [vmem:[#allocation2 + $0x70] sm:$0xff]  ;;  %s865_s9 = scalar_lea.vmem %s742_s8, 2048  ;;  %p870_p9 = scmp.lt.s32.totalorder %s742_s8, %s742_s8 }
  0x17   :  { %46 = vadd.xlane.f32.xlu0 %v45_v7  ;;  %v968_v16 = vld [vmem:[#allocation2 + $0x20] sm:$0xff]  ;;  %v970_v17 = vld [vmem:[#allocation2 + $0x28] sm:$0xff]  ;;  %v63_v18 = vadd.f32 %v966_v15, %v964_v14  ;;  %v982_v23 = vld [vmem:[#allocation2 + $0x78] sm:$0xff]  ;;  %v95_v28 = vmax.f32 %v964_v14, %v966_v15  ;;  %p866_p8 = scmp.ne.s32.totalorder %s742_s8, %s865_s9  ;;  %p871_p10 = scmp.lt.s32.totalorder %s865_s9, %s865_s9 }
  0x18   :  { %v51_v19 = vadd.f32 %v970_v17, %v968_v16  ;;  %v984_v24 = vld [vmem:[#allocation2 + $0x30] sm:$0xff]  ;;  %v986_v25 = vld [vmem:[#allocation2 + $0x38] sm:$0xff]  ;;  %v66_v26 = vadd.f32 %v982_v23, %v980_v22  ;;  %v83_v29 = vmax.f32 %v968_v16, %v970_v17  ;;  %v98_v30 = vmax.f32 %v980_v22, %v982_v23  ;;  %v110_v52 = vld [vmem:[%s1060_s1] sm:$0xff] }
  0x19   :  { %v54_v27 = vadd.f32 %v986_v25, %v984_v24  ;;  %v86_v31 = vmax.f32 %v984_v24, %v986_v25  ;;  %776 = vmatpush3.xpose.msk.msra.mxu0 %vm189_vm1, %v110_v52  ;;  %vm793_vm4 = vmpackc.low %vm416_vm3, %vm416_vm3  ;;  %p872_p11 = por %p871_p10, %p870_p9 }
  0x1a   :  { %61 = vadd.xlane.f32.xlu1 %v60_v10  ;;  %v896_v10 = vmov 1983009808  }
  0x1b   :  { %58 = vadd.xlane.f32.xlu0 %v57_v11  ;;  %v183_v11 = vunpack.c.l.s4 %v896_v10  ;;  %p873_p12 = pnand %p872_p11, %p866_p8 }
  0x1e   :  { %90 = vmax.xlane.f32.xlu1 %v89_v12  ;;  %v185_v12 = vlaneseq }
  0x1f   :  { %78 = vmax.xlane.f32.xlu0 %v77_v13  ;;  %v184_v13 = vunpack.c.0.s8 %v183_v11 }
  0x22   :  { %64 = vadd.xlane.f32.xlu1 %v63_v18  ;;  %v186_v18 = vshrl.u32 %v185_v12, 7 }
  0x23   :  { %52 = vadd.xlane.f32.xlu0 %v51_v19 }
  0x26   :  { %93 = vmax.xlane.f32.xlu1 %v92_v20  ;;  %v187_v20 = vsub.s32 %v184_v13, %v186_v18 }
  0x27   :  { %81 = vmax.xlane.f32.xlu0 %v80_v21 }
  0x2a   :  { %67 = vadd.xlane.f32.xlu1 %v66_v26 }
  0x2b   :  { %55 = vadd.xlane.f32.xlu0 %v54_v27 }
  0x2e   :  { %96 = vmax.xlane.f32.xlu1 %v95_v28 }
  0x2f   :  { %84 = vmax.xlane.f32.xlu0 %v83_v29 }
  0x32   :  { %99 = vmax.xlane.f32.xlu1 %v98_v30 }
  0x33   :  { %87 = vmax.xlane.f32.xlu0 %v86_v31 }
  0xa3   :  { %v50_v32 = vpop.xlane.xlu1 %49 }
  0xa4   :  { %v47_v33 = vpop.xlane.xlu0 %46  ;;  %v70_v45 = vmul.f32 0.00390625, %v50_v32  ;;  %v111_v32 = vld [vmem:[%s1061_s2] sm:$0xff] }
  0xa5   :  { %v69_v37 = vmul.f32 0.00390625, %v47_v33  ;;  %v112_v33 = vld [vmem:[%s1061_s2 + $0x8] sm:$0xff] }
  0xa7   :  { %v62_v34 = vpop.xlane.xlu1 %61 }
  0xa8   :  { %v59_v35 = vpop.xlane.xlu0 %58  ;;  %v74_v44 = vmul.f32 0.00390625, %v62_v34  ;;  %v897_v34 = vmov 0.0|0.0  }
  0xa9   :  { %v73_v36 = vmul.f32 0.00390625, %v59_v35  ;;  %791 = vmatprep.subr.bf16.mxu1 %v897_v34  ;;  %v792_v35 = vpack.c.bf16 %v112_v33, %v111_v32 }
  0xab   :  { %v91_v38 = vpop.xlane.xlu1 %90  ;;  %794 = vmatpush3.bf16.xpose.msk.msra.mxu1 %vm793_vm4, %v792_v35 }
  0xac   :  { %v79_v39 = vpop.xlane.xlu0 %78  ;;  %v106_v40 = vsel %vm101_vm0, %v73_v36, %v91_v38  ;;  %795 = vmatprep.subr.bf16.mxu1 %v897_v34  ;;  %v113_v36 = vld [vmem:[%s1061_s2 + $0x10] sm:$0xff] }
  0xad   :  { %147 = vxpose.xlu1.b32.start [1/4] (short) (narrow) %v106_v40, 8  ;;  %v102_v41 = vsel %vm101_vm0, %v69_v37, %v79_v39  ;;  %v114_v37 = vld [vmem:[%s1061_s2 + $0x18] sm:$0xff]  ;;  %s898_s2 = smov 127  }
  0xae   :  { %115 = vxpose.xlu0.b32.start [1/4] (short) (narrow) %v102_v41, 8  ;;  %v796_v38 = vpack.c.bf16 %v114_v37, %v113_v36 }
  0xaf   :  { %v65_v42 = vpop.xlane.xlu1 %64 }
  0xb0   :  { %v53_v43 = vpop.xlane.xlu0 %52  ;;  %v75_v54 = vmul.f32 0.00390625, %v65_v42 }
  0xb1   :  { %v71_v55 = vmul.f32 0.00390625, %v53_v43 }
  0xb3   :  { %v94_v46 = vpop.xlane.xlu1 %93  ;;  %798 = vmatpush3.bf16.xpose.msk.msra.mxu1 %vm793_vm4, %v796_v38 }
  0xb4   :  { %v82_v47 = vpop.xlane.xlu0 %81  ;;  %v107_v48 = vsel %vm101_vm0, %v74_v44, %v94_v46 }
  0xb5   :  { %148 = vxpose.xlu1.b32.cont [2/4] (short) (narrow) %v107_v48, 8  ;;  %v103_v49 = vsel %vm101_vm0, %v70_v45, %v82_v47 }
  0xb6   :  { %116 = vxpose.xlu0.b32.cont [2/4] (short) (narrow) %v103_v49, 8 }
  0xb7   :  { %v68_v50 = vpop.xlane.xlu1 %67 }
  0xb8   :  { %v56_v53 = vpop.xlane.xlu0 %55  ;;  %v76_v60 = vmul.f32 0.00390625, %v68_v50 }
  0xb9   :  { %v72_v61 = vmul.f32 0.00390625, %v56_v53 }
  0xbb   :  { %v97_v56 = vpop.xlane.xlu1 %96 }
  0xbc   :  { %v85_v57 = vpop.xlane.xlu0 %84  ;;  %v108_v58 = vsel %vm101_vm0, %v75_v54, %v97_v56 }
  0xbd   :  { %149 = vxpose.xlu1.b32.cont [3/4] (short) (narrow) %v108_v58, 8  ;;  %v104_v59 = vsel %vm101_vm0, %v71_v55, %v85_v57  ;;  %v899_v58 = vmov 0  }
  0xbe   :  { %117 = vxpose.xlu0.b32.cont [3/4] (short) (narrow) %v104_v59, 8 }
  0xbf   :  { %v100_v62 = vpop.xlane.xlu1 %99 }
  0xc0   :  { %v88_v63 = vpop.xlane.xlu0 %87  ;;  %v109_v3 = vsel %vm101_vm0, %v76_v60, %v100_v62 }
  0xc1   :  { %150 = vxpose.xlu1.b32.end [4/4] (short) (narrow) %v109_v3, 8  ;;  %v105_v7 = vsel %vm101_vm0, %v72_v61, %v88_v63 }
  0xc2   :  { %118 = vxpose.xlu0.b32.end [4/4] (short) (narrow) %v105_v7, 8 }
 0x135   :  { %v163_v19 = vpop.trf.xlu1 }
 0x136   :  { %v131_v21 = vpop.trf.xlu0 }
 0x137   :  { %v181_v26 = vcombine.low %v131_v21, %v163_v19 }
 0x139   :  { %v188_v27 = vrot.slane %v181_v26, %v187_v20 }
 0x13b   :  { %778 = vmatmul.mubr.msk.f32.vlgmr.msra.gmra.mrb[0].mxu0 %vm189_vm1, %v188_v27 }
 0x20e   :  { %v261_v28 = vpop.f32.mrb[0].mxu0 }
 0x20f   :  { %v272_v29 = vrot.slane %v261_v28, %v187_v20  ;;  %v779_v30 = vpop.f32.mrb[1].mxu0 }
 0x211   :  { %276 = vxpose.xlu0.b32.start.end [1/1] (short) (narrow) %v272_v29, 8  ;;  %v273_v31 = vcombine.high %v272_v29, %v272_v29 }
 0x215   :  { %308 = vxpose.xlu0.b32.start.end [1/1] (short) (narrow) %v273_v31, 8 }
 0x291   :  { %v292_v39 = vpop.trf.xlu0 }
 0x292   :  { %v340_v40 = vmax.f32 %v292_v39, 0.0 }
 0x294   :  { %342 = vxpose.xlu1.b32.start.end [1/1] (short) (narrow) %v340_v40, 8 }
 0x295   :  { %v324_v41 = vpop.trf.xlu0 }
 0x296   :  { %v341_v42 = vmax.f32 %v324_v41, 0.0 }
 0x298   :  { %374 = vxpose.xlu0.b32.start.end [1/1] (short) (narrow) %v341_v42, 8 }
 0x314   :  { %v358_v43 = vpop.trf.xlu1 }
 0x318   :  { %v390_v44 = vpop.trf.xlu0 }
 0x319   :  { %v408_v45 = vcombine.low %v358_v43, %v390_v44 }
 0x31b   :  { %v415_v46 = vrot.slane %v408_v45, %v187_v20 }
 0x31d   :  { %789 = vmatmul.mubr.msk.f32.vlgmr.msra.gmra.mrb[0].mxu1 %vm416_vm3, %v415_v46 }
 0x3f0   :  { %v497_v47 = vpop.f32.mrb[0].mxu1 }
 0x3f1   :  { %v508_v48 = vrot.slane %v497_v47, %v187_v20  ;;  %v790_v49 = vpop.f32.mrb[1].mxu1 }
 0x3f3   :  { %512 = vxpose.xlu1.b32.start.end [1/1] (short) (narrow) %v508_v48, 32  ;;  %v509_v50 = vcombine.high %v508_v48, %v508_v48 }
 0x3f5   :  { %544 = vxpose.xlu0.b32.start.end [1/1] (short) (narrow) %v509_v50, 32 }
 0x411   :  { %810 = vset.pattern.permute.xlu1 %v899_v58 }
 0x41e   :  { %809 = vset.pattern.permute.xlu0 %v899_v58 }
 0x473   :  { %v528_v51 = vpop.trf.xlu1 }
 0x474   :  { %584 = vrot.lane.b32.xlu1 %v528_v51, %s898_s2 }
 0x475   :  { %v560_v52 = vpop.trf.xlu0 }
 0x477   :  { %v529_v53 = vpop.trf.xlu1 }
 0x478   :  { %586 = vrot.lane.b32.xlu0 %v529_v53, %s898_s2  ;;  %592 = vrot.lane.b32.xlu1 %v560_v52, %s898_s2 }
 0x479   :  { %v561_v54 = vpop.trf.xlu0 }
 0x47b   :  { %v530_v55 = vpop.trf.xlu1 }
 0x47c   :  { %594 = vrot.lane.b32.xlu1 %v561_v54, %s898_s2 }
 0x47d   :  { %v562_v56 = vpop.trf.xlu0 }
 0x47e   :  { %596 = vrot.lane.b32.xlu0 %v562_v56, %s898_s2 }
 0x47f   :  { %v531_v57 = vpop.trf.xlu1 }
 0x480   :  { %588 = vrot.lane.b32.xlu1 %v530_v55, %s898_s2 }
 0x481   :  { %v563_v59 = vpop.trf.xlu0 }
 0x484   :  { %590 = vrot.lane.b32.xlu1 %v531_v57, %s898_s2 }
 0x488   :  { %598 = vrot.lane.b32.xlu1 %v563_v59, %s898_s2 }
 0x4e6   :  { %v585_v60 = vpop.permute.xlu1 %584 }
 0x4e7   :  { %v608_v61 = vadd.f32 %v585_v60, %v528_v51 }
 0x4e9   :  { %v760_v62 = vmul.f32 -1.442695, %v608_v61 }
 0x4ea   :  { %v593_v63 = vpop.permute.xlu1 %592  ;;  %v587_v3 = vpop.permute.xlu0 %586 }
 0x4eb   :  { %811 = vpow2.f32 %v760_v62  ;;  %v612_v7 = vadd.f32 %v593_v63, %v560_v52  ;;  %v609_v10 = vadd.f32 %v587_v3, %v529_v53 }
 0x4ed   :  { %v764_v11 = vmul.f32 -1.442695, %v612_v7  ;;  %v761_v12 = vmul.f32 -1.442695, %v609_v10 }
 0x4ee   :  { %v595_v13 = vpop.permute.xlu1 %594 }
 0x4ef   :  { %813 = vpow2.f32 %v764_v11  ;;  %v613_v18 = vadd.f32 %v595_v13, %v561_v54 }
 0x4f0   :  { %815 = vpow2.f32 %v761_v12  ;;  %v597_v19 = vpop.permute.xlu0 %596 }
 0x4f1   :  { %v765_v20 = vmul.f32 -1.442695, %v613_v18  ;;  %v614_v21 = vadd.f32 %v597_v19, %v562_v56 }
 0x4f2   :  { %v589_v26 = vpop.permute.xlu1 %588 }
 0x4f3   :  { %817 = vpow2.f32 %v765_v20  ;;  %v766_v27 = vmul.f32 -1.442695, %v614_v21  ;;  %v610_v28 = vadd.f32 %v589_v26, %v530_v55 }
 0x4f5   :  { %v812_v29 = vpop.eup %811  ;;  %v762_v30 = vmul.f32 -1.442695, %v610_v28  ;;  %819 = vpow2.f32 %v766_v27 }
 0x4f6   :  { %v640_v31 = vadd.f32 1.0, %v812_v29  ;;  %v591_v32 = vpop.permute.xlu1 %590 }
 0x4f7   :  { %821 = vpow2.f32 %v762_v30  ;;  %v611_v33 = vadd.f32 %v591_v32, %v531_v57 }
 0x4f8   :  { %823 = vrcp.f32 %v640_v31 }
 0x4f9   :  { %v814_v34 = vpop.eup %813  ;;  %v763_v35 = vmul.f32 -1.442695, %v611_v33 }
 0x4fa   :  { %v816_v36 = vpop.eup %815  ;;  %v644_v37 = vadd.f32 1.0, %v814_v34  ;;  %v599_v38 = vpop.permute.xlu1 %598 }
 0x4fb   :  { %v641_v39 = vadd.f32 1.0, %v816_v36  ;;  %825 = vpow2.f32 %v763_v35  ;;  %v615_v40 = vadd.f32 %v599_v38, %v563_v59 }
 0x4fc   :  { %827 = vrcp.f32 %v644_v37 }
 0x4fd   :  { %v818_v41 = vpop.eup %817  ;;  %v767_v42 = vmul.f32 -1.442695, %v615_v40  ;;  %829 = vrcp.f32 %v641_v39 }
 0x4fe   :  { %v645_v43 = vadd.f32 1.0, %v818_v41 }
 0x4ff   :  { %831 = vpow2.f32 %v767_v42  ;;  %v820_v44 = vpop.eup %819 }
 0x500   :  { %833 = vrcp.f32 %v645_v43  ;;  %v646_v48 = vadd.f32 1.0, %v820_v44 }
 0x501   :  { %v822_v45 = vpop.eup %821 }
 0x502   :  { %v824_v46 = vpop.eup %823  ;;  %v642_v47 = vadd.f32 1.0, %v822_v45 }
 0x503   :  { %666 = vperm.xlu0 %809, %v824_v46  }
 0x504   :  { %835 = vrcp.f32 %v642_v47 }
 0x505   :  { %v826_v49 = vpop.eup %825  ;;  %837 = vrcp.f32 %v646_v48 }
 0x506   :  { %v828_v50 = vpop.eup %827  ;;  %v643_v51 = vadd.f32 1.0, %v826_v49 }
 0x507   :  { %686 = vperm.xlu1 %810, %v828_v50   ;;  %v830_v52 = vpop.eup %829 }
 0x508   :  { %839 = vrcp.f32 %v643_v51 }
 0x509   :  { %v832_v53 = vpop.eup %831 }
 0x50a   :  { %v834_v54 = vpop.eup %833  ;;  %v647_v55 = vadd.f32 1.0, %v832_v53 }
 0x50b   :  { %691 = vperm.xlu0 %809, %v834_v54   ;;  %671 = vperm.xlu1 %810, %v830_v52  }
 0x50c   :  { %841 = vrcp.f32 %v647_v55 }
 0x50e   :  { %v836_v56 = vpop.eup %835 }
 0x50f   :  { %676 = vperm.xlu1 %810, %v836_v56   ;;  %v838_v57 = vpop.eup %837 }
 0x512   :  { %v840_v58 = vpop.eup %839 }
 0x513   :  { %681 = vperm.xlu0 %809, %v840_v58   ;;  %696 = vperm.xlu1 %810, %v838_v57  }
 0x516   :  { %v842_v59 = vpop.eup %841 }
 0x517   :  { %701 = vperm.xlu0 %809, %v842_v59  }
 0x582   :  { %v667_v60 = vpop.permute.xlu0 %666 }
 0x583   :  { %v704_v61 = vmul.f32 %v667_v60, %v940_v2  ;;  %v705_v62 = vmul.f32 %v667_v60, %v944_v4 }
 0x585   :  { %720 = vst [vmem:[#allocation5] sm:$0xff] %v704_v61  ;;  %721 = vst [vmem:[#allocation5 + $0x8] sm:$0xff] %v705_v62 }
 0x586   :  { %v687_v63 = vpop.permute.xlu1 %686 }
 0x587   :  { %v712_v3 = vmul.f32 %v687_v63, %v952_v8  ;;  %v713_v7 = vmul.f32 %v687_v63, %v954_v9 }
 0x589   :  { %728 = vst [vmem:[#allocation5 + $0x40] sm:$0xff] %v712_v3  ;;  %729 = vst [vmem:[#allocation5 + $0x48] sm:$0xff] %v713_v7 }
 0x58a   :  { %v672_v10 = vpop.permute.xlu1 %671  ;;  %v692_v11 = vpop.permute.xlu0 %691 }
 0x58b   :  { %v706_v12 = vmul.f32 %v672_v10, %v936_v0  ;;  %v707_v13 = vmul.f32 %v672_v10, %v938_v1  ;;  %v714_v18 = vmul.f32 %v692_v11, %v946_v5  ;;  %v715_v2 = vmul.f32 %v692_v11, %v948_v6 }
 0x58d   :  { %722 = vst [vmem:[#allocation5 + $0x10] sm:$0xff] %v706_v12  ;;  %723 = vst [vmem:[#allocation5 + $0x18] sm:$0xff] %v707_v13 }
 0x58e   :  { %730 = vst [vmem:[#allocation5 + $0x50] sm:$0xff] %v714_v18  ;;  %731 = vst [vmem:[#allocation5 + $0x58] sm:$0xff] %v715_v2  ;;  %v677_v4 = vpop.permute.xlu1 %676 }
 0x58f   :  { %v708_v8 = vmul.f32 %v677_v4, %v968_v16  ;;  %v709_v9 = vmul.f32 %v677_v4, %v970_v17 }
 0x591   :  { %724 = vst [vmem:[#allocation5 + $0x20] sm:$0xff] %v708_v8  ;;  %725 = vst [vmem:[#allocation5 + $0x28] sm:$0xff] %v709_v9 }
 0x592   :  { %v697_v19 = vpop.permute.xlu1 %696  ;;  %v682_v20 = vpop.permute.xlu0 %681 }
 0x593   :  { %v716_v0 = vmul.f32 %v697_v19, %v964_v14  ;;  %v717_v1 = vmul.f32 %v697_v19, %v966_v15  ;;  %v710_v5 = vmul.f32 %v682_v20, %v984_v24  ;;  %v711_v6 = vmul.f32 %v682_v20, %v986_v25 }
 0x595   :  { %732 = vst [vmem:[#allocation5 + $0x60] sm:$0xff] %v716_v0  ;;  %733 = vst [vmem:[#allocation5 + $0x68] sm:$0xff] %v717_v1 }
 0x596   :  { %726 = vst [vmem:[#allocation5 + $0x30] sm:$0xff] %v710_v5  ;;  %727 = vst [vmem:[#allocation5 + $0x38] sm:$0xff] %v711_v6  ;;  %v702_v16 = vpop.permute.xlu0 %701 }
 0x597   :  { %v718_v17 = vmul.f32 %v702_v16, %v980_v22  ;;  %v719_v21 = vmul.f32 %v702_v16, %v982_v23 }
 0x599   :  { %734 = vst [vmem:[#allocation5 + $0x70] sm:$0xff] %v718_v17  ;;  %735 = vst [vmem:[#allocation5 + $0x78] sm:$0xff] %v719_v21 }
 0x59a   :  { %876 = shalt.err (!%p873_p12)
}
 0x59b   :  { %s877_s12 = scalar_lea.hbm %s1062_s3, 2048 }
 0x59c   :  { %p878_p13 = scmp.ne.s32.totalorder %s1062_s3, %s877_s12  ;;  %p881_p0 = scmp.lt.u32.totalorder %s877_s12, %s1062_s3 }
 0x59e   :  { %p883_p1 = pnand %p881_p0, %p878_p13 }
 0x5a0   :  { %886 = shalt.err (!%p883_p1)
}
 0x5a1   :  { %747 = dma.vmem_to_hbm [thread:$0]  %s742_s8, 2048, %s1062_s3, [#allocation4], %s892_s22, %s892_s22, %s893_s23  }
 0x5a2   :  { %889 = dma.done.wait [#allocation4], 2048  }
 0x5a3   :  { %890 = vsyncadd [#allocation4], 4294965248 }
 0x5a4   :  { %751 = vsyncpa [#allocation3], 1 }
 0x5a5   :  { %752 = vsyncpa [#allocation4], 1 }

</bundles_post_ra>
